<compile_context>
chip_gen: v6e
topology: v6e:2x2x1
jax: 0.10.0
libtpu: 0.0.40
codegen_flags: <defaults>
</compile_context>

<pallas_src>
import numpy as np
import jax
import jax.numpy as jnp
from jax.experimental import pallas as pl
from jax.experimental.pallas import tpu as pltpu


def _round_up(x, m):
    return ((x + m - 1) // m) * m


def _cdiv(a, b):
    return -(-a // b)


def single_signal_stft(x, n_fft=34, tile_m=2048):
    """Pallas implementation of SingleSignalSTFT.forward for x of shape (B, T, C)."""
    B, T, C = x.shape
    assert n_fft >= 4
    hop = n_fft // 4
    n_freq = n_fft // 2 + 1
    n_out = 2 * n_freq
    pad = n_fft // 2
    assert T > pad, "reflect padding requires T > n_fft // 2"

    # ---- glue: channel sum first (cheap streaming pass), then reflect pad.
    s = jnp.sum(x.astype(jnp.float32), axis=-1)                # (B, T)
    s_pad = jnp.pad(s, ((0, 0), (pad, pad)), mode="reflect")   # (B, L)
    L = T + 2 * pad
    n_frames = 1 + (L - n_fft) // hop

    # Each frame = n_blocks chunks of `hop` samples (last chunk zero-padded).
    n_blocks = _cdiv(n_fft, hop)
    k_pad = n_blocks * hop

    # ---- tile size over frames: multiple of 128 so the output block is lane aligned.
    tm = max(128, (tile_m // 128) * 128)
    tm = min(tm, _round_up(n_frames, 128))
    if B * _cdiv(n_frames, tm) < 2 and n_frames > 128:
        # v7x has 2 TensorCores: make sure the parallel grid has >= 2 blocks.
        tm = _round_up(_cdiv(n_frames, 2), 128)
    num_tiles = _cdiv(n_frames, tm)

    # ---- per-tile hop-reshaped windows, transposed so the long (row) axis is on lanes.
    R = _round_up(tm + n_blocks - 1, 8)          # hop-rows needed per tile (tidy rounding)
    l_rows = (num_tiles - 1) * tm + R
    l_tot = l_rows * hop
    if l_tot >= L:
        s_zp = jnp.pad(s_pad, ((0, 0), (0, l_tot - L)))
    else:
        # trailing samples that can never complete a frame
        s_zp = s_pad[:, :l_tot]
    sig_rows = s_zp.reshape(B, l_rows, hop)                     # S[r, c] = s[r*hop + c]
    row_idx = (jnp.arange(num_tiles) * tm)[:, None] + jnp.arange(R)[None, :]
    windows = sig_rows[:, row_idx, :]                           # (B, num_tiles, R, hop)
    windows_t = jnp.transpose(windows, (0, 1, 3, 2))            # (B, num_tiles, hop, R)
    # TODO(synk): this small XLA window gather (~1.005x the signal) could be replaced by
    # memory_space=pl.ANY + pltpu.make_async_copy manual windowing to save one more
    # ~B*L HBM round-trip.

    # ---- DFT basis: host-side f64 trig, real/imag interleaved along columns
    # (col = 2k real, 2k+1 imag), rows zero-padded to n_blocks*hop, transposed.
    n = np.arange(n_fft, dtype=np.float64)[:, None]
    k = np.arange(n_freq, dtype=np.float64)[None, :]
    ang = 2.0 * np.pi * n * k / n_fft
    basis = np.stack([np.cos(ang), -np.sin(ang)], axis=-1).reshape(n_fft, n_out)
    basis = np.pad(basis, ((0, k_pad - n_fft), (0, 0)))
    dft_t = jnp.asarray(basis.T.astype(np.float32))             # (n_out, k_pad) = (36, 40)

    def kernel(win_ref, dft_ref, o_ref):
        # win_ref: (hop, R).  frames^T assembled from n_blocks lane-shifted slices of
        # the shared window (XLU/vst slots have slack in this mem-bound kernel), then a
        # single MXU matmul: (n_out, k_pad) @ (k_pad, tm) with frames on the lane axis.
        frames_t = jnp.concatenate(
            [win_ref[:, j:j + tm] for j in range(n_blocks)], axis=0)  # (k_pad, tm)
        o_ref[...] = jnp.dot(dft_ref[...], frames_t,
                             preferred_element_type=jnp.float32)      # (n_out, tm)

    out3 = pl.pallas_call(
        kernel,
        out_shape=jax.ShapeDtypeStruct((B, n_out, num_tiles * tm), jnp.float32),
        grid=(B, num_tiles),
        in_specs=[
            pl.BlockSpec((None, None, hop, R), lambda b, m: (b, m, 0, 0)),
            pl.BlockSpec((n_out, k_pad), lambda b, m: (0, 0)),   # VMEM-resident basis
        ],
        out_specs=pl.BlockSpec((None, n_out, tm), lambda b, m: (b, 0, m)),
        compiler_params=pltpu.CompilerParams(
            dimension_semantics=("parallel", "parallel"),
            # Double-buffered footprint ~1.3 MiB at tm=2048 -- safe even on v7x (64 MiB).
            vmem_limit_bytes=32 * 1024 * 1024,
        ),
    )(windows_t, dft_t)

    # ---- epilogue: drop padded frames; columns are (k, re/im)-interleaved, so only a
    # minor-axis swap is needed to reach the torch.stft layout (B, n_freq, F, 2).
    out = out3[:, :, :n_frames].reshape(B, n_freq, 2, n_frames)
    return jnp.transpose(out, (0, 1, 3, 2))


def _stft_reference(x, n_fft=34):
    """Pure-JAX reference matching torch.stft defaults (return_complex=False)."""
    hop = n_fft // 4
    n_freq = n_fft // 2 + 1
    pad = n_fft // 2
    s = jnp.sum(x, axis=-1)
    s_pad = jnp.pad(s, ((0, 0), (pad, pad)), mode="reflect")
    n_frames = 1 + (s_pad.shape[1] - n_fft) // hop
    idx = jnp.arange(n_frames)[:, None] * hop + jnp.arange(n_fft)[None, :]
    frames = s_pad[:, idx].astype(jnp.float32)  # (B, F, n_fft)
    n = jnp.arange(n_fft, dtype=jnp.float32)[:, None]
    k = jnp.arange(n_freq, dtype=jnp.float32)[None, :]
    ang = 2.0 * np.pi * n * k / n_fft
    real = jnp.einsum("bfn,nk->bkf", frames, jnp.cos(ang))
    imag = jnp.einsum("bfn,nk->bkf", frames, -jnp.sin(ang))
    return jnp.stack([real, imag], axis=-1)


if __name__ == "__main__":
    # Small deterministic input consistent with the module: (B, T, C)
    key = jax.random.PRNGKey(0)
    B, T, C = 2, 64, 4
    x = jax.random.normal(key, (B, T, C), dtype=jnp.float32)

    n_fft = 34
    out = single_signal_stft(x, n_fft=n_fft)
    out = jax.block_until_ready(out)

    ref = _stft_reference(x, n_fft=n_fft)
    expected_frames = 1 + (T + 2 * (n_fft // 2) - n_fft) // (n_fft // 4)
    assert out.shape == (B, n_fft // 2 + 1, expected_frames, 2), out.shape
    np.testing.assert_allclose(np.asarray(out), np.asarray(ref), rtol=1e-4, atol=1e-3)

    print("KERNEL_OK")
</pallas_src>

<mosaic_0001>
module attributes {stable_mosaic.version = 11 : i64} {
  func.func @kernel(%arg0: i32, %arg1: i32, %arg2: memref<1x1x8x136xf32, #tpu.memory_space<vmem>>, %arg3: memref<36x40xf32, #tpu.memory_space<vmem>>, %arg4: memref<1x36x128xf32, #tpu.memory_space<vmem>>) attributes {dimension_semantics = [#tpu.dimension_semantics<parallel>, #tpu.dimension_semantics<parallel>], iteration_bounds = array<i64: 2, 1>, scalar_prefetch = 0 : i64, scratch_operands = 0 : i64, tpu.core_type = #tpu.core_type<tc>, window_params = [{transform_indices = @transform_0, window_bounds = array<i64: 1, 1, 8, 136>}, {pipeline_mode = #tpu.pipeline_mode<synchronous>, transform_indices = @transform_1, window_bounds = array<i64: 36, 40>}, {transform_indices = @transform_2, window_bounds = array<i64: 1, 36, 128>}]} {
    %c0 = arith.constant 0 : index
    %c0_0 = arith.constant 0 : index
    %c0_1 = arith.constant 0 : index
    %c0_2 = arith.constant 0 : index
    %0 = vector.load %arg2[%c0, %c0_0, %c0_1, %c0_2] : memref<1x1x8x136xf32, #tpu.memory_space<vmem>>, vector<1x1x8x128xf32>
    %1 = vector.shape_cast %0 : vector<1x1x8x128xf32> to vector<8x128xf32>
    %c0_3 = arith.constant 0 : index
    %c0_4 = arith.constant 0 : index
    %c0_5 = arith.constant 0 : index
    %c1 = arith.constant 1 : index
    %2 = vector.load %arg2[%c0_3, %c0_4, %c0_5, %c1] : memref<1x1x8x136xf32, #tpu.memory_space<vmem>>, vector<1x1x8x128xf32>
    %3 = vector.shape_cast %2 : vector<1x1x8x128xf32> to vector<8x128xf32>
    %c0_6 = arith.constant 0 : index
    %c0_7 = arith.constant 0 : index
    %c0_8 = arith.constant 0 : index
    %c2 = arith.constant 2 : index
    %4 = vector.load %arg2[%c0_6, %c0_7, %c0_8, %c2] : memref<1x1x8x136xf32, #tpu.memory_space<vmem>>, vector<1x1x8x128xf32>
    %5 = vector.shape_cast %4 : vector<1x1x8x128xf32> to vector<8x128xf32>
    %c0_9 = arith.constant 0 : index
    %c0_10 = arith.constant 0 : index
    %c0_11 = arith.constant 0 : index
    %c3 = arith.constant 3 : index
    %6 = vector.load %arg2[%c0_9, %c0_10, %c0_11, %c3] : memref<1x1x8x136xf32, #tpu.memory_space<vmem>>, vector<1x1x8x128xf32>
    %7 = vector.shape_cast %6 : vector<1x1x8x128xf32> to vector<8x128xf32>
    %c0_12 = arith.constant 0 : index
    %c0_13 = arith.constant 0 : index
    %c0_14 = arith.constant 0 : index
    %c4 = arith.constant 4 : index
    %8 = vector.load %arg2[%c0_12, %c0_13, %c0_14, %c4] : memref<1x1x8x136xf32, #tpu.memory_space<vmem>>, vector<1x1x8x128xf32>
    %9 = vector.shape_cast %8 : vector<1x1x8x128xf32> to vector<8x128xf32>
    %10 = tpu.concatenate %1, %3, %5, %7, %9 in 0 : vector<8x128xf32>, vector<8x128xf32>, vector<8x128xf32>, vector<8x128xf32>, vector<8x128xf32> -> vector<40x128xf32>
    %c0_15 = arith.constant 0 : index
    %c0_16 = arith.constant 0 : index
    %11 = vector.load %arg3[%c0_15, %c0_16] : memref<36x40xf32, #tpu.memory_space<vmem>>, vector<36x40xf32>
    %cst = arith.constant dense<0.000000e+00> : vector<36x128xf32>
    %12 = tpu.matmul %11, %10, %cst {dimension_numbers = #tpu.dot_dimension_numbers<[1], [0], [0], [1], [0, 0, 1, 1], [], []>} : vector<36x40xf32>, vector<40x128xf32>, vector<36x128xf32> -> vector<36x128xf32>
    %c0_17 = arith.constant 0 : index
    %c0_18 = arith.constant 0 : index
    %c0_19 = arith.constant 0 : index
    %13 = vector.load %arg4[%c0_17, %c0_18, %c0_19] : memref<1x36x128xf32, #tpu.memory_space<vmem>>, vector<1x36x128xf32>
    %14 = vector.shape_cast %13 : vector<1x36x128xf32> to vector<36x128xf32>
    %15 = vector.shape_cast %12 : vector<36x128xf32> to vector<1x36x128xf32>
    tpu.vector_store %arg4[%c0_17, %c0_18, %c0_19], %15 {strides = array<i32>} : memref<1x36x128xf32, #tpu.memory_space<vmem>>, vector<1x36x128xf32>,
    return
  }
  func.func @transform_0(%arg0: i32, %arg1: i32) -> (i32, i32, i32, i32) {
    %c0_i32 = arith.constant 0 : i32
    %c0_i32_0 = arith.constant 0 : i32
    %c0_i32_1 = arith.constant 0 : i32
    return %arg0, %arg1, %c0_i32, %c0_i32_0 : i32, i32, i32, i32
  }
  func.func @transform_1(%arg0: i32, %arg1: i32) -> (i32, i32) {
    %c0_i32 = arith.constant 0 : i32
    %c0_i32_0 = arith.constant 0 : i32
    %c0_i32_1 = arith.constant 0 : i32
    return %c0_i32, %c0_i32_0 : i32, i32
  }
  func.func @transform_2(%arg0: i32, %arg1: i32) -> (i32, i32, i32) {
    %c0_i32 = arith.constant 0 : i32
    %c0_i32_0 = arith.constant 0 : i32
    return %arg0, %c0_i32, %arg1 : i32, i32, i32
  }
}

</mosaic_0001>

<bundles_post_ra>
// kernel: tpu_custom_call.1
= control target key start
LH: loop header
LB: loop body
LE: loop exit
PB: predicated region body
PF: predicated region fallthrough
CT: control target
= control target key end

     0   :  { %7 = vsyncpa [#allocation3], 0  ;;  %s872_s0 = inlined_call_operand.hbm [shape: f32[2,1,8,136], index: 0, kind: input, shape index: {}]   ;;  %s873_s1 = inlined_call_operand.hbm [shape: f32[36,40], index: 1, kind: input, shape index: {}]   ;;  %s874_s2 = inlined_call_operand.vmem [shape: f32[2,36,128], index: 2, kind: output, shape index: {}]  }
   0x1   :  { %9 = vsyncpa [#allocation3 + $0x1], 0 }
   0x2   :  { %10 = vsyncpa [#allocation5], 0  ;;  %s726_s9 = smov 0   ;;  %s728_s10 = smov 0  }
   0x3   :  { %s730_s11 = smov 0   ;;  %s732_s12 = smov 0  }
   0x4   :  { %s734_s13 = smov 0   ;;  %s736_s14 = smov 0  }
   0x5 LB: > { %s451_s15 = sadd.s32 4294967295, %s699_s14   ;;  %p50_p0 = scmp.ne.s32.totalorder %s683_s10, %s679_s9  ;;  %s699_s14 = sphi %s736_s14, %s16_s14   ;;  %s695_s13 = sphi %s734_s13, %s884_s13   ;;  %s691_s12 = sphi %s732_s12, %s883_s12   ;;  %s687_s11 = sphi %s730_s11, %s882_s11   ;;  %s683_s10 = sphi %s728_s10, %s881_s10   ;;  %s679_s9 = sphi %s726_s9, %s880_s9  }
   0x6   : > { %p756_p1 = scmp.eq.s32.totalorder %s451_s15, 0  ;;  %p453_p2 = scmp.ge.s32.totalorder %s699_s14, 1 }
   0x7   : > { %p110_p3 = scmp.lt.s32.totalorder %s699_s14, 3  ;;  %s701_s19 = smov [#allocation4]  }
   0x8   : > { %p764_p4 = por %p756_p1, %p50_p0  ;;  %s122_s20 = sshll.u32 %s701_s19, 4  ;;  %s123_s20 = int_to_ptr.vmem [resolvable:$true] %s122_s20 }
   0x9   : > { %p768_p5 = pnand %p453_p2, %p110_p3  ;;  %s28_s22 = sadd.s32 1, %s695_s13 }
   0xa   : > { %s602_s23 = scalar_lea.vmem %s123_s20, 640  ;;  %p610_p12 = scmp.lt.s32.totalorder %s123_s20, %s123_s20 }
   0xb   : > { %p523_p6 = pneg %p768_p5  ;;  %p603_p9 = scmp.ne.s32.totalorder %s123_s20, %s602_s23 }
   0xc   : > { %p611_p13 = scmp.lt.s32.totalorder %s602_s23, %s602_s23 }
   0xd   : > { %p776_p7 = pnand %p523_p6, %p756_p1 }
   0xe   : > { %p612_p0 = por %p611_p13, %p610_p12 }
   0xf   : > { %p593_p8 = pneg %p776_p7 }
  0x11   : > { %p605_p10 = pnand %p603_p9, %p593_p8 }
  0x13   : > { %p606_p11 = pneg %p605_p10 }
  0x15   : > { %p613_p2 = pnand %p612_p0, %p606_p11 }
  0x17   : > { %616 = shalt.err (!%p613_p2)
}
  0x18   : > { %s702_s24 = smov 128   ;;  %s703_s25 = smov 8  }
  0x19   : > { %526 = dma.hbm_to_vmem [thread:$0]  (!%p776_p7), %s873_s1, 640, %s123_s20, [#allocation5], %s702_s24, %s702_s24, %s703_s25  }
  0x1a   : > { %p30_p3 = scmp.ge.s32.totalorder %s28_s22, 2  ;;  %s37_s28 = sadd.s32 1, %s687_s11 }
  0x1b   : > { %p44_p6 = scmp.ne.s32.totalorder %s687_s11, %s683_s10  ;;  %p45_p8 = scmp.eq.s32.totalorder %s699_s14, 0 }
  0x1c   : > { %s886_s22 = smov (%p30_p3, %s28_s22), 0  ;;  %p532_p10 = scmp.lt.s32.totalorder %s699_s14, 2 }
  0x1d   : > { %p46_p9 = por %p45_p8, %p44_p6  ;;  %s32_s29 = ssub.s32 %s695_s13, %s886_s22 }
  0x1e   : > { %s136_s30 = sand.u32 1, %s687_s11   ;;  %p35_p11 = scmp.eq.s32.totalorder %s32_s29, 0 }
  0x1f   : > { %s456_s3 = sshll.u32 %s136_s30, 4  ;;  %s470_s4 = sshll.u32 %s695_s13, 8 }
  0x20   : > { %s800_s5 = scalar_select %p35_p11, %s687_s11, %s37_s28  }
  0x21   : > { %s148_s8 = scalar_lea.hbm %s872_s0, %s470_s4  ;;  %s140_s9 = scalar_lea.vmem [#allocation2], %s456_s3 }
  0x22   : > { %s150_s15 = sshll.u32 %s140_s9, 4  ;;  %p805_p7 = pnand %p532_p10, %p46_p9  ;;  %s151_s15 = int_to_ptr.vmem [resolvable:$true] %s150_s15 }
  0x23   : > { %s137_s20 = scalar_lea.sflag [#allocation3], %s136_s30  ;;  %s630_s21 = scalar_lea.vmem %s151_s15, 256 }
  0x24   : > { %p619_p12 = pneg %p805_p7  ;;  %p631_p13 = scmp.ne.s32.totalorder %s151_s15, %s630_s21 }
  0x25   : > { %s704_s23 = smov [#allocation2]  }
  0x26   : > { %p633_p0 = pnand %p631_p13, %p619_p12  ;;  %s635_s24 = sshll.u32 %s704_s23, 4  ;;  %s636_s24 = int_to_ptr.vmem [resolvable:$false] %s635_s24 }
  0x27   : > { %s637_s25 = scalar_lea.vmem %s636_s24, 512  ;;  %p638_p3 = scmp.lt.s32.totalorder %s151_s15, %s636_s24 }
  0x28   : > { %p634_p2 = pneg %p633_p0  ;;  %p639_p6 = scmp.lt.s32.totalorder %s637_s25, %s630_s21 }
  0x2a   : > { %p640_p8 = por %p639_p6, %p638_p3 }
  0x2c   : > { %p641_p9 = pnand %p640_p8, %p634_p2 }
  0x2e   : > { %644 = shalt.err (!%p641_p9)
}
  0x2f   : > { %530 = dma.hbm_to_vmem [thread:$0]  (!%p805_p7), %s148_s8, 256, %s151_s15, %s137_s20  }
  0x30   : > { %159 = sbr.rel (%p768_p5) target bundleno = 392 (0x188), region = 28  ;;  %s161_s26 = sand.u32 (!%p768_p5), 1, %s683_s10  }
  0x31   : > { %s460_s27 = sshll.u32 (!%p768_p5), %s161_s26, 4  ;;  %s162_s28 = scalar_lea.sflag (!%p768_p5), [#allocation3], %s161_s26 }
  0x32   : > { %s165_s29 = scalar_lea.vmem (!%p768_p5), [#allocation2], %s460_s27 }
  0x35   : > { %670 = dma.done.wait (%p764_p4), %s162_s28, 256  }
  0x36   : > { %672 = vsyncadd (%p764_p4), %s162_s28, 4294967040 }
  0x37   : > { %674 = dma.done.wait (%p756_p1), [#allocation5], 640  }
  0x38   : > { %676 = vsyncadd (%p756_p1), [#allocation5], 4294966656  ;;  %v705_v0 = vmov 0.0   ;;  %v201_v1 = vld [vmem:[%s165_s29] sm:$0xff]  ;;  %s706_s18 = smov 125   ;;  %s707_s30 = smov 124  }
  0x39   : > { %481 = vmatprep.subr.mxu0 %v705_v0  ;;  %506 = vmatprep.subr.mxu1 %v705_v0  ;;  %v202_v2 = vld [vmem:[%s165_s29 + $0x8] sm:$0xff]  ;;  %vm708_vm0 = vmmov 0   ;;  %s709_s16 = smov 126   ;;  %s710_s17 = smov 127   ;;  %vm230_vm1 = vcmask 1014784   ;;  %vm223_vm2 = vcmask 1022976  }
  0x3a   : > { %219 = vrot.lane.b32.xlu1 %v201_v1, %s706_s18  ;;  %226 = vrot.lane.b32.xlu0 %v201_v1, %s707_s30  ;;  %vm216_vm3 = vcmask 1031168   ;;  %vm209_vm4 = vcmask 1039360   ;;  %v233_v15 = vld [vmem:[#allocation4] sm:$0xff]  ;;  %vm238_vm5 = vcmask 326656   ;;  %v236_v16 = vld [vmem:[#allocation4 + $0x18] sm:$0xff]  ;;  %v234_v17 = vld [vmem:[#allocation4 + $0x8] sm:$0xff] }
  0x3b   : > { %491 = vmatprep.mubr.msk.f32.mxu0 %vm708_vm0, %v705_v0  ;;  %500 = vmatprep.mubr.msk.f32.mxu1 %vm708_vm0, %v705_v0  ;;  %v237_v18 = vld [vmem:[#allocation4 + $0x20] sm:$0xf]  ;;  %v235_v19 = vld [vmem:[#allocation4 + $0x10] sm:$0xff]  ;;  %p193_p1 = scmp.lt.s32.totalorder %s691_s12, 1 }
  0x3d   : > { %s888_s12 = smov (!%p193_p1, %s691_s12), 1 }
  0x3e   : > { %221 = vrot.lane.b32.xlu1 %v202_v2, %s706_s18  ;;  %228 = vrot.lane.b32.xlu0 %v202_v2, %s707_s30  ;;  %s516_s3 = smul.u32 40, %s888_s12 }
  0x40   : > { %s200_s7 = scalar_lea.vmem %s874_s2, %s516_s3 }
  0x42   : > { %214 = vrot.lane.b32.xlu1 %v202_v2, %s709_s16  ;;  %212 = vrot.lane.b32.xlu0 %v201_v1, %s709_s16 }
  0x46   : > { %207 = vrot.lane.b32.xlu1 %v202_v2, %s710_s17  ;;  %205 = vrot.lane.b32.xlu0 %v201_v1, %s710_s17 }
  0xac   : > { %v220_v3 = vpop.permute.xlu1 %219  ;;  %v227_v4 = vpop.permute.xlu0 %226 }
  0xb0   : > { %v222_v5 = vpop.permute.xlu1 %221  ;;  %v229_v6 = vpop.permute.xlu0 %228 }
  0xb1   : > { %v231_v7 = vsel %vm230_vm1, %v227_v4, %v229_v6  ;;  %v224_v8 = vsel %vm223_vm2, %v220_v3, %v222_v5 }
  0xb2   : > { %482 = vmatpush3.msra.mxu0 %v231_v7  ;;  %511 = vmatpush3.msra.mxu1 %v231_v7 }
  0xb3   : > { %483 = vmatprep.subr.mxu0 %v705_v0  ;;  %507 = vmatprep.subr.mxu1 %v705_v0 }
  0xb4   : > { %v215_v9 = vpop.permute.xlu1 %214  ;;  %484 = vmatpush3.msra.mxu0 %v224_v8  ;;  %512 = vmatpush3.msra.mxu1 %v224_v8  ;;  %v213_v10 = vpop.permute.xlu0 %212 }
  0xb5   : > { %485 = vmatprep.subr.mxu0 %v705_v0  ;;  %508 = vmatprep.subr.mxu1 %v705_v0  ;;  %v217_v11 = vsel %vm216_vm3, %v213_v10, %v215_v9 }
  0xb6   : > { %486 = vmatpush3.msra.mxu0 %v217_v11  ;;  %513 = vmatpush3.msra.mxu1 %v217_v11 }
  0xb7   : > { %487 = vmatprep.subr.mxu0 %v705_v0  ;;  %509 = vmatprep.subr.mxu1 %v705_v0 }
  0xb8   : > { %v208_v12 = vpop.permute.xlu1 %207  ;;  %v206_v13 = vpop.permute.xlu0 %205 }
  0xb9   : > { %v210_v14 = vsel %vm209_vm4, %v206_v13, %v208_v12 }
  0xba   : > { %488 = vmatpush3.msra.mxu0 %v210_v14  ;;  %514 = vmatpush3.msra.mxu1 %v210_v14 }
  0xbb   : > { %489 = vmatprep.subr.mxu0 %v705_v0  ;;  %510 = vmatprep.subr.mxu1 %v705_v0 }
  0xbc   : > { %490 = vmatpush3.msra.mxu0 %v201_v1  ;;  %515 = vmatpush3.msra.mxu1 %v201_v1 }
  0xbd   : > { %492 = vmatmul.mubr.msk.f32.vlgmr.msra.gmra.mxu0 %vm238_vm5, %v233_v15  ;;  %501 = vmatmul.mubr.msk.f32.vlgmr.msra.gmra.mxu1 %vm238_vm5, %v236_v16 }
  0xbe   : > { %494 = vmatprep.mubr.msk.f32.mxu0 %vm708_vm0, %v705_v0  ;;  %503 = vmatprep.mubr.msk.f32.mxu1 %vm708_vm0, %v705_v0 }
  0xc1   : > { %495 = vmatmul.mubr.msk.f32.gmra.mxu0 %vm238_vm5, %v234_v17  ;;  %504 = vmatmul.mubr.msk.f32.gmra.mxu1 %vm238_vm5, %v237_v18 }
  0xc2   : > { %497 = vmatprep.mubr.msk.f32.mxu0 %vm708_vm0, %v705_v0 }
  0xc5   : > { %498 = vmatmul.mubr.msk.f32.gmra.mxu0 %vm238_vm5, %v235_v19 }
 0x17d   : > { %v320_v20 = vpop.f32.mrf.mxu0  ;;  %v335_v21 = vpop.f32.mrf.mxu1 }
 0x17e   : > { %344 = vst [vmem:[%s200_s7] sm:$0xff] %v320_v20  ;;  %347 = vst [vmem:[%s200_s7 + $0x18] sm:$0xff] %v335_v21 }
 0x17f   : > { %v493_v22 = vpop.f32.mrf.mxu0  ;;  %v502_v23 = vpop.f32.mrf.mxu1 }
 0x181   : > { %v325_v24 = vpop.f32.mrf.mxu0  ;;  %v340_v25 = vpop.f32.mrf.mxu1 }
 0x182   : > { %345 = vst [vmem:[%s200_s7 + $0x8] sm:$0xff] %v325_v24  ;;  %348 = vst [vmem:[%s200_s7 + $0x20] sm:$0xf] %v340_v25 }
 0x183   : > { %v496_v26 = vpop.f32.mrf.mxu0  ;;  %v505_v27 = vpop.f32.mrf.mxu1 }
 0x185   : > { %v330_v28 = vpop.f32.mrf.mxu0 }
 0x186   : > { %346 = vst [vmem:[%s200_s7 + $0x10] sm:$0xff] %v330_v28 }
 0x187   : > { %v499_v29 = vpop.f32.mrf.mxu0 }
 0x188 PF: > { %s16_s14 = sadd.s32 1, %s699_s14   ;;  %s880_s9 = smov %s683_s10 }
 0x189   : > { %p13_p4 = scmp.ge.s32.totalorder %s16_s14, 4   ;;  %s881_s10 = smov %s687_s11 }
 0x18a   : > { %s882_s11 = smov %s800_s5  ;;  %s883_s12 = smov %s695_s13 }
 0x18b   : > { %s884_s13 = smov %s886_s22  ;;  %15 = sbr.rel (!%p13_p4) target bundleno = 5 (0x5), region = 72 }
 0x190   :  { %376 = vsyncpa [#allocation3], 1 }
 0x191   :  { %378 = vsyncpa [#allocation3 + $0x1], 1 }
 0x192   :  { %379 = vsyncpa [#allocation5], 1 }

</bundles_post_ra>
